<compile_context>
chip_gen: v7x
topology: tpu7x:2x2x1
jax: 0.10.0
libtpu: 0.0.40
codegen_flags: <defaults>
</compile_context>

<pallas_src>
import jax
import jax.numpy as jnp
from jax.experimental import pallas as pl
from jax.experimental.pallas import tpu as pltpu

HIDDEN_SIZE = 128
INPUT_SIZE = 3000
NUM_CLASSES = 4


def _mlp_kernel(x_ref, w1_ref, b1_ref, w2_ref, b2_ref, o_ref):
    # fc1: (TB, D) @ (D, H) with f32 MXU accumulation, then bias + ReLU in f32.
    h = jnp.dot(x_ref[...], w1_ref[...], preferred_element_type=jnp.float32)
    h = jnp.maximum(h + b1_ref[...], 0.0)
    # fc2: (TB, H) @ (H, C) + bias, single writeback.
    out = jnp.dot(h, w2_ref[...], preferred_element_type=jnp.float32)
    o_ref[...] = (out + b2_ref[...]).astype(o_ref.dtype)


def prepare_params(w1, b1, w2, b2):
    """One-time parameter prep (hoisted out of the per-call path).

    w1: (input_size, hidden)  -> bf16 (dominant HBM traffic, ~0.75 MB)
    b1: (hidden,)             -> (1, hidden) f32
    w2: (hidden, num_classes) -> f32 (tiny, kept full precision)
    b2: (num_classes,)        -> (1, num_classes) f32
    """
    w1_bf16 = jnp.asarray(w1, jnp.float32).astype(jnp.bfloat16)
    b1_2d = jnp.asarray(b1, jnp.float32).reshape(1, -1)
    w2_f32 = jnp.asarray(w2, jnp.float32)
    b2_2d = jnp.asarray(b2, jnp.float32).reshape(1, -1)
    return w1_bf16, b1_2d, w2_f32, b2_2d


def spoofing_detection_forward(x, w1_bf16, b1, w2, b2, *, batch_tile=256):
    """x: (B, input_size) f32; params from prepare_params. Returns (B, num_classes) f32."""
    B, D = x.shape
    H = w1_bf16.shape[1]
    C = w2.shape[1]

    # Single grid step for small B; tile the batch (parallel axis -> v7x dual-TC)
    # once the caller batches enough rows. Full-dim blocks are (8,128)-exempt.
    tb = B if B <= batch_tile else batch_tile
    b_pad = pl.cdiv(B, tb) * tb
    if b_pad != B:
        x = jnp.pad(x, ((0, b_pad - B), (0, 0)))  # zero rows; sliced off below
    n_b = b_pad // tb

    # bf16 only for the streamed MXU operand; epilogue math stays f32.
    x = x.astype(jnp.bfloat16)

    out = pl.pallas_call(
        _mlp_kernel,
        out_shape=jax.ShapeDtypeStruct((b_pad, C), jnp.float32),
        grid=(n_b,),
        in_specs=[
            pl.BlockSpec((tb, D), lambda i: (i, 0)),   # x: per-batch-tile
            pl.BlockSpec((D, H), lambda i: (0, 0)),    # w1: resident, full K
            pl.BlockSpec((1, H), lambda i: (0, 0)),    # b1: resident
            pl.BlockSpec((H, C), lambda i: (0, 0)),    # w2: resident
            pl.BlockSpec((1, C), lambda i: (0, 0)),    # b2: resident
        ],
        out_specs=pl.BlockSpec((tb, C), lambda i: (i, 0)),
        compiler_params=pltpu.CompilerParams(
            dimension_semantics=("parallel",),  # batch axis: megacore-shardable on v7x
            vmem_limit_bytes=16 << 20,          # worst case ~5 MB at tb=256; ample slack
        ),
    )(x, w1_bf16, b1, w2, b2)

    return out[:B] if b_pad != B else out


def init_params(key, input_size, hidden_size, num_classes):
    """Deterministic nn.Linear-style init (uniform(-1/sqrt(fan_in), 1/sqrt(fan_in)))."""
    k1, k2, k3, k4 = jax.random.split(key, 4)
    lim1 = 1.0 / jnp.sqrt(jnp.float32(input_size))
    lim2 = 1.0 / jnp.sqrt(jnp.float32(hidden_size))
    # Stored already transposed relative to PyTorch (in_features, out_features).
    w1 = jax.random.uniform(k1, (input_size, hidden_size), jnp.float32, -lim1, lim1)
    b1 = jax.random.uniform(k2, (hidden_size,), jnp.float32, -lim1, lim1)
    w2 = jax.random.uniform(k3, (hidden_size, num_classes), jnp.float32, -lim2, lim2)
    b2 = jax.random.uniform(k4, (num_classes,), jnp.float32, -lim2, lim2)
    return w1, b1, w2, b2


if __name__ == "__main__":
    key = jax.random.PRNGKey(0)
    kx, kp = jax.random.split(key)

    # TODO(synk): production callers should batch requests to B>=128/256 (MXU rows)
    # and, for a latency service, keep w1 VMEM-resident across calls; B=8 here is
    # a small, deterministic smoke test consistent with the module.
    batch = 8
    x = jax.random.normal(kx, (batch, INPUT_SIZE), jnp.float32)
    w1, b1, w2, b2 = init_params(kp, INPUT_SIZE, HIDDEN_SIZE, NUM_CLASSES)

    # One-time param prep (bf16 weight cast hoisted out of the forward path).
    params = prepare_params(w1, b1, w2, b2)
    fwd = jax.jit(spoofing_detection_forward)

    out = jax.block_until_ready(fwd(x, *params))

    # Pure-JAX reference with the same bf16 input/weight quantization
    # (kernel accumulates in f32, so this matches tightly).
    xb = x.astype(jnp.bfloat16)
    w1b = w1.astype(jnp.bfloat16)
    h_ref = jnp.maximum(
        jnp.dot(xb, w1b, preferred_element_type=jnp.float32) + b1, 0.0
    )
    ref = jnp.dot(h_ref, w2, preferred_element_type=jnp.float32) + b2

    assert out.shape == (batch, NUM_CLASSES)
    assert jnp.allclose(out, ref, atol=1e-3, rtol=1e-3), "mismatch vs reference"

    print("KERNEL_OK")
</pallas_src>

<mosaic_0001>
module attributes {stable_mosaic.version = 11 : i64} {
  func.func @_mlp_kernel(%arg0: i32, %arg1: memref<8x3000xbf16, #tpu.memory_space<vmem>>, %arg2: memref<3000x128xbf16, #tpu.memory_space<vmem>>, %arg3: memref<1x128xf32, #tpu.memory_space<vmem>>, %arg4: memref<128x4xf32, #tpu.memory_space<vmem>>, %arg5: memref<1x4xf32, #tpu.memory_space<vmem>>, %arg6: memref<8x4xf32, #tpu.memory_space<vmem>>) attributes {dimension_semantics = [#tpu.dimension_semantics<parallel>], iteration_bounds = array<i64: 1>, scalar_prefetch = 0 : i64, scratch_operands = 0 : i64, tpu.core_type = #tpu.core_type<tc>, window_params = [{transform_indices = @transform_0, window_bounds = array<i64: 8, 3000>}, {pipeline_mode = #tpu.pipeline_mode<synchronous>, transform_indices = @transform_1, window_bounds = array<i64: 3000, 128>}, {pipeline_mode = #tpu.pipeline_mode<synchronous>, transform_indices = @transform_2, window_bounds = array<i64: 1, 128>}, {pipeline_mode = #tpu.pipeline_mode<synchronous>, transform_indices = @transform_3, window_bounds = array<i64: 128, 4>}, {pipeline_mode = #tpu.pipeline_mode<synchronous>, transform_indices = @transform_4, window_bounds = array<i64: 1, 4>}, {transform_indices = @transform_5, window_bounds = array<i64: 8, 4>}]} {
    %c0 = arith.constant 0 : index
    %c0_0 = arith.constant 0 : index
    %0 = vector.load %arg1[%c0, %c0_0] : memref<8x3000xbf16, #tpu.memory_space<vmem>>, vector<8x3000xbf16>
    %c0_1 = arith.constant 0 : index
    %c0_2 = arith.constant 0 : index
    %1 = vector.load %arg2[%c0_1, %c0_2] : memref<3000x128xbf16, #tpu.memory_space<vmem>>, vector<3000x128xbf16>
    %cst = arith.constant dense<0.000000e+00> : vector<8x128xf32>
    %2 = tpu.matmul %0, %1, %cst {dimension_numbers = #tpu.dot_dimension_numbers<[1], [0], [0], [1], [0, 0, 1, 1], [], []>} : vector<8x3000xbf16>, vector<3000x128xbf16>, vector<8x128xf32> -> vector<8x128xf32>
    %c0_3 = arith.constant 0 : index
    %c0_4 = arith.constant 0 : index
    %3 = vector.load %arg3[%c0_3, %c0_4] : memref<1x128xf32, #tpu.memory_space<vmem>>, vector<1x128xf32>
    %4 = vector.broadcast %3 : vector<1x128xf32> to vector<8x128xf32>
    %5 = arith.addf %2, %4 : vector<8x128xf32>
    %cst_5 = arith.constant 0.000000e+00 : f32
    %6 = vector.broadcast %cst_5 : f32 to vector<8x128xf32>
    %7 = arith.maximumf %5, %6 : vector<8x128xf32>
    %c0_6 = arith.constant 0 : index
    %c0_7 = arith.constant 0 : index
    %8 = vector.load %arg4[%c0_6, %c0_7] : memref<128x4xf32, #tpu.memory_space<vmem>>, vector<128x4xf32>
    %cst_8 = arith.constant dense<0.000000e+00> : vector<8x4xf32>
    %9 = tpu.matmul %7, %8, %cst_8 {dimension_numbers = #tpu.dot_dimension_numbers<[1], [0], [0], [1], [0, 0, 1, 1], [], []>} : vector<8x128xf32>, vector<128x4xf32>, vector<8x4xf32> -> vector<8x4xf32>
    %c0_9 = arith.constant 0 : index
    %c0_10 = arith.constant 0 : index
    %10 = vector.load %arg5[%c0_9, %c0_10] : memref<1x4xf32, #tpu.memory_space<vmem>>, vector<1x4xf32>
    %11 = vector.broadcast %10 : vector<1x4xf32> to vector<8x4xf32>
    %12 = arith.addf %9, %11 : vector<8x4xf32>
    %c0_11 = arith.constant 0 : index
    %c0_12 = arith.constant 0 : index
    %13 = vector.load %arg6[%c0_11, %c0_12] : memref<8x4xf32, #tpu.memory_space<vmem>>, vector<8x4xf32>
    tpu.vector_store %arg6[%c0_11, %c0_12], %12 {strides = array<i32>} : memref<8x4xf32, #tpu.memory_space<vmem>>, vector<8x4xf32>,
    return
  }
  func.func @transform_0(%arg0: i32) -> (i32, i32) {
    %c0_i32 = arith.constant 0 : i32
    %c0_i32_0 = arith.constant 0 : i32
    return %arg0, %c0_i32 : i32, i32
  }
  func.func @transform_1(%arg0: i32) -> (i32, i32) {
    %c0_i32 = arith.constant 0 : i32
    %c0_i32_0 = arith.constant 0 : i32
    %c0_i32_1 = arith.constant 0 : i32
    return %c0_i32, %c0_i32_0 : i32, i32
  }
  func.func @transform_2(%arg0: i32) -> (i32, i32) {
    %c0_i32 = arith.constant 0 : i32
    %c0_i32_0 = arith.constant 0 : i32
    %c0_i32_1 = arith.constant 0 : i32
    return %c0_i32, %c0_i32_0 : i32, i32
  }
  func.func @transform_3(%arg0: i32) -> (i32, i32) {
    %c0_i32 = arith.constant 0 : i32
    %c0_i32_0 = arith.constant 0 : i32
    %c0_i32_1 = arith.constant 0 : i32
    return %c0_i32, %c0_i32_0 : i32, i32
  }
  func.func @transform_4(%arg0: i32) -> (i32, i32) {
    %c0_i32 = arith.constant 0 : i32
    %c0_i32_0 = arith.constant 0 : i32
    %c0_i32_1 = arith.constant 0 : i32
    return %c0_i32, %c0_i32_0 : i32, i32
  }
  func.func @transform_5(%arg0: i32) -> (i32, i32) {
    %c0_i32 = arith.constant 0 : i32
    %c0_i32_0 = arith.constant 0 : i32
    return %arg0, %c0_i32 : i32, i32
  }
}

</mosaic_0001>

<bundles_post_ra>
// kernel: spoofing_detection_forward.1
= control target key start
LH: loop header
LB: loop body
LE: loop exit
PB: predicated region body
PF: predicated region fallthrough
CT: control target
= control target key end

     0   :  { %10 = vsyncpa [#allocation3], 0  ;;  %s3002_s18 = smov [#allocation2]   ;;  %s3156_s0 = inlined_call_operand.vmem [shape: bf16[8,3000], index: 0, kind: input, shape index: {}]   ;;  %s3157_s1 = inlined_call_operand.hbm [shape: bf16[3000,128], index: 1, kind: input, shape index: {}]   ;;  %s3158_s2 = inlined_call_operand.vmem [shape: f32[1,128], index: 2, kind: input, shape index: {}]   ;;  %s3159_s3 = inlined_call_operand.vmem [shape: f32[128,4], index: 3, kind: input, shape index: {}]   ;;  %s3160_s4 = inlined_call_operand.vmem [shape: f32[1,4], index: 4, kind: input, shape index: {}]   ;;  %s3161_s5 = inlined_call_operand.vmem [shape: f32[8,4], index: 5, kind: output, shape index: {}]  }
   0x1   :  { %s18_s19 = sshll.u32 %s3002_s18, 4  ;;  %s2978_s22 = scalar_lea.hbm %s3157_s1, 24000  ;;  %s19_s19 = int_to_ptr.vmem [resolvable:$true] %s18_s19 }
   0x2   :  { %p2979_p0 = scmp.ne.s32.totalorder %s3157_s1, %s2978_s22  ;;  %p2982_p1 = scmp.lt.u32.totalorder %s2978_s22, %s3157_s1 }
   0x4   :  { %p2984_p2 = pnand %p2982_p1, %p2979_p0 }
   0x6   :  { %2987 = shalt.err (!%p2984_p2)
}
   0x7   :  { %s2988_s27 = scalar_lea.vmem %s19_s19, 24000  ;;  %p2993_p4 = scmp.lt.s32.totalorder %s19_s19, %s19_s19 }
   0x8   :  { %p2989_p3 = scmp.ne.s32.totalorder %s19_s19, %s2988_s27  ;;  %p2994_p5 = scmp.lt.s32.totalorder %s2988_s27, %s2988_s27 }
   0xa   :  { %p2995_p6 = por %p2994_p5, %p2993_p4 }
   0xc   :  { %p2996_p7 = pnand %p2995_p6, %p2989_p3 }
   0xe   :  { %2999 = shalt.err (!%p2996_p7)
}
   0xf   :  { %s3003_s28 = smov 64   ;;  %s3004_s29 = smov 4  }
  0x10   :  { %24 = dma.hbm_to_vmem [thread:$0]  %s3157_s1, 24000, %s19_s19, [#allocation3], %s3003_s28, %s3003_s28, %s3004_s29  }
  0x11   :  { %3000 = dma.done.wait [#allocation3], 24000  }
  0x12   :  { %3001 = vsyncadd [#allocation3], 4294943296  ;;  %v2766_v0 = vld [vmem:[#allocation2 + $0x40] sm:$0xff]   ;;  %v2770_v4 = vld [vmem:[#allocation2 + $0x48] sm:$0xff]   ;;  %vm1637_vm0 = vcmask 457728   ;;  %vm1641_vm1 = vcmask 1043456  }
  0x13   :  { %v2767_v1 = vld [vmem:[#allocation2 + $0xc0] sm:$0xff]   ;;  %2441 = vmatprep.subr.bf16.mxu0 %v2766_v0  ;;  %v2771_v5 = vld [vmem:[#allocation2 + $0xc8] sm:$0xff]   ;;  %v2774_v8 = vld [vmem:[#allocation2 + $0x50] sm:$0xff]   ;;  %vm3007_vm2 = vmmov 0   ;;  %vm2219_vm3 = vcmask 31744  }
  0x14   :  { %v2768_v2 = vld [vmem:[#allocation2] sm:$0xff]   ;;  %2463 = vmatprep.subr.bf16.mxu1 %v2767_v1  ;;  %v2772_v6 = vld [vmem:[#allocation2 + $0x8] sm:$0xff]   ;;  %v2775_v9 = vld [vmem:[#allocation2 + $0xd0] sm:$0xff]  }
  0x15   :  { %v2769_v3 = vld [vmem:[#allocation2 + $0x80] sm:$0xff]   ;;  %2442 = vmatpush3.bf16.msra.mxu0 %v2768_v2  ;;  %v2773_v7 = vld [vmem:[#allocation2 + $0x88] sm:$0xff]   ;;  %v2776_v10 = vld [vmem:[#allocation2 + $0x10] sm:$0xff]  }
  0x16   :  { %2464 = vmatpush3.bf16.msra.mxu1 %v2769_v3  ;;  %2443 = vmatprep.subr.bf16.mxu0 %v2770_v4  ;;  %v2777_v11 = vld [vmem:[#allocation2 + $0x90] sm:$0xff]   ;;  %v2778_v12 = vld [vmem:[#allocation2 + $0x58] sm:$0xff]   ;;  %v2782_v16 = vld [vmem:[#allocation2 + $0x60] sm:$0xff]  }
  0x17   :  { %2465 = vmatprep.subr.bf16.mxu1 %v2771_v5  ;;  %v2779_v13 = vld [vmem:[#allocation2 + $0xd8] sm:$0xff]   ;;  %v2783_v17 = vld [vmem:[#allocation2 + $0xe0] sm:$0xff]   ;;  %v2786_v20 = vld [vmem:[#allocation2 + $0x68] sm:$0xff]  }
  0x18   :  { %v2780_v14 = vld [vmem:[#allocation2 + $0x18] sm:$0xff]   ;;  %v2784_v18 = vld [vmem:[#allocation2 + $0x20] sm:$0xff]   ;;  %v2787_v21 = vld [vmem:[#allocation2 + $0xe8] sm:$0xff]  }
  0x19   :  { %2444 = vmatpush3.bf16.msra.mxu0 %v2772_v6  ;;  %v2781_v15 = vld [vmem:[#allocation2 + $0x98] sm:$0xff]   ;;  %v2785_v19 = vld [vmem:[#allocation2 + $0xa0] sm:$0xff]   ;;  %v2788_v22 = vld [vmem:[#allocation2 + $0x28] sm:$0xff]  }
  0x1a   :  { %2466 = vmatpush3.bf16.msra.mxu1 %v2773_v7  ;;  %2445 = vmatprep.subr.bf16.mxu0 %v2774_v8  ;;  %v2789_v23 = vld [vmem:[#allocation2 + $0xa8] sm:$0xff]   ;;  %v2790_v24 = vld [vmem:[#allocation2 + $0x70] sm:$0xff]   ;;  %v2794_v28 = vld [vmem:[#allocation2 + $0x78] sm:$0xff]  }
  0x1b   :  { %2467 = vmatprep.subr.bf16.mxu1 %v2775_v9  ;;  %v2791_v25 = vld [vmem:[#allocation2 + $0xf0] sm:$0xff]   ;;  %v2795_v29 = vld [vmem:[#allocation2 + $0xf8] sm:$0xff]   ;;  %v35_v32 = vld [vmem:[%s3156_s0] sm:$0xff] }
  0x1c   :  { %v2792_v26 = vld [vmem:[#allocation2 + $0x30] sm:$0xff]   ;;  %v2796_v30 = vld [vmem:[#allocation2 + $0x38] sm:$0xff]   ;;  %v36_v33 = vld [vmem:[%s3156_s0 + $0x8] sm:$0xff]  ;;  %v2227_v34 = vcombine.low %v35_v32, %v35_v32  ;;  %v2228_v35 = vcombine.high %v35_v32, %v35_v32 }
  0x1d   :  { %2446 = vmatpush3.bf16.msra.mxu0 %v2776_v10  ;;  %v2793_v27 = vld [vmem:[#allocation2 + $0xb0] sm:$0xff]   ;;  %v2797_v31 = vld [vmem:[#allocation2 + $0xb8] sm:$0xff]   ;;  %v2229_v36 = vcombine.low %v36_v33, %v36_v33  ;;  %v2230_v37 = vcombine.high %v36_v33, %v36_v33  ;;  %v2802_v38 = vld [vmem:[#allocation2 + $0x140] sm:$0xff]  }
  0x1e   :  { %2468 = vmatpush3.bf16.msra.mxu1 %v2777_v11  ;;  %2447 = vmatprep.subr.bf16.mxu0 %v2778_v12  ;;  %v2803_v39 = vld [vmem:[#allocation2 + $0x1c0] sm:$0xff]   ;;  %v2806_v42 = vld [vmem:[#allocation2 + $0x148] sm:$0xff]   ;;  %v2810_v46 = vld [vmem:[#allocation2 + $0x150] sm:$0xff]  }
  0x1f   :  { %2469 = vmatprep.subr.bf16.mxu1 %v2779_v13  ;;  %1677 = vmatprep.mubr.bf16.mxu0 %v2228_v35  ;;  %v2804_v40 = vld [vmem:[#allocation2 + $0x100] sm:$0xff]   ;;  %v2807_v43 = vld [vmem:[#allocation2 + $0x1c8] sm:$0xff]   ;;  %v2811_v47 = vld [vmem:[#allocation2 + $0x1d0] sm:$0xff]  }
  0x20   :  { %1717 = vmatprep.mubr.bf16.mxu1 %v2230_v37  ;;  %v2805_v41 = vld [vmem:[#allocation2 + $0x180] sm:$0xff]   ;;  %v2808_v44 = vld [vmem:[#allocation2 + $0x108] sm:$0xff]   ;;  %v2812_v48 = vld [vmem:[#allocation2 + $0x110] sm:$0xff]  }
  0x21   :  { %2448 = vmatpush3.bf16.msra.mxu0 %v2780_v14  ;;  %v2809_v45 = vld [vmem:[#allocation2 + $0x188] sm:$0xff]   ;;  %v2813_v49 = vld [vmem:[#allocation2 + $0x190] sm:$0xff]   ;;  %v2814_v50 = vld [vmem:[#allocation2 + $0x158] sm:$0xff]  }
  0x22   :  { %2470 = vmatpush3.bf16.msra.mxu1 %v2781_v15  ;;  %2449 = vmatprep.subr.bf16.mxu0 %v2782_v16  ;;  %v2815_v51 = vld [vmem:[#allocation2 + $0x1d8] sm:$0xff]   ;;  %v2818_v54 = vld [vmem:[#allocation2 + $0x160] sm:$0xff]   ;;  %v2822_v58 = vld [vmem:[#allocation2 + $0x168] sm:$0xff]  }
  0x23   :  { %2471 = vmatprep.subr.bf16.mxu1 %v2783_v17  ;;  %v2816_v52 = vld [vmem:[#allocation2 + $0x118] sm:$0xff]   ;;  %v2819_v55 = vld [vmem:[#allocation2 + $0x1e0] sm:$0xff]   ;;  %v2823_v59 = vld [vmem:[#allocation2 + $0x1e8] sm:$0xff]  }
  0x24   :  { %v2817_v53 = vld [vmem:[#allocation2 + $0x198] sm:$0xff]   ;;  %v2820_v56 = vld [vmem:[#allocation2 + $0x120] sm:$0xff]   ;;  %v2824_v60 = vld [vmem:[#allocation2 + $0x128] sm:$0xff]  }
  0x25   :  { %2450 = vmatpush3.bf16.msra.mxu0 %v2784_v18  ;;  %v2821_v57 = vld [vmem:[#allocation2 + $0x1a0] sm:$0xff]   ;;  %v2825_v61 = vld [vmem:[#allocation2 + $0x1a8] sm:$0xff]   ;;  %v2826_v62 = vld [vmem:[#allocation2 + $0x170] sm:$0xff]  }
  0x26   :  { %2472 = vmatpush3.bf16.msra.mxu1 %v2785_v19  ;;  %2451 = vmatprep.subr.bf16.mxu0 %v2786_v20  ;;  %v2827_v63 = vld [vmem:[#allocation2 + $0x1f0] sm:$0xff]   ;;  %v2830_v2 = vld [vmem:[#allocation2 + $0x178] sm:$0xff]   ;;  %v2838_v12 = vld [vmem:[#allocation2 + $0x240] sm:$0xff]  }
  0x27   :  { %2473 = vmatprep.subr.bf16.mxu1 %v2787_v21  ;;  %v2828_v0 = vld [vmem:[#allocation2 + $0x130] sm:$0xff]   ;;  %v2831_v3 = vld [vmem:[#allocation2 + $0x1f8] sm:$0xff]   ;;  %v2839_v13 = vld [vmem:[#allocation2 + $0x2c0] sm:$0xff]  }
  0x28   :  { %v2829_v1 = vld [vmem:[#allocation2 + $0x1b0] sm:$0xff]   ;;  %v2832_v4 = vld [vmem:[#allocation2 + $0x138] sm:$0xff]   ;;  %v2840_v14 = vld [vmem:[#allocation2 + $0x200] sm:$0xff]  }
  0x29   :  { %2452 = vmatpush3.bf16.msra.mxu0 %v2788_v22  ;;  %v2833_v5 = vld [vmem:[#allocation2 + $0x1b8] sm:$0xff]   ;;  %v37_v6 = vld [vmem:[%s3156_s0 + $0x10] sm:$0xff]  ;;  %v2841_v15 = vld [vmem:[#allocation2 + $0x280] sm:$0xff]  }
  0x2a   :  { %2474 = vmatpush3.bf16.msra.mxu1 %v2789_v23  ;;  %2453 = vmatprep.subr.bf16.mxu0 %v2790_v24  ;;  %v2231_v7 = vcombine.low %v37_v6, %v37_v6  ;;  %v2232_v8 = vcombine.high %v37_v6, %v37_v6  ;;  %v38_v9 = vld [vmem:[%s3156_s0 + $0x18] sm:$0xff]  ;;  %v2842_v16 = vld [vmem:[#allocation2 + $0x248] sm:$0xff]   ;;  %v2846_v20 = vld [vmem:[#allocation2 + $0x250] sm:$0xff]  }
  0x2b   :  { %2475 = vmatprep.subr.bf16.mxu1 %v2791_v25  ;;  %v2233_v10 = vcombine.low %v38_v9, %v38_v9  ;;  %v2234_v11 = vcombine.high %v38_v9, %v38_v9  ;;  %v2843_v17 = vld [vmem:[#allocation2 + $0x2c8] sm:$0xff]   ;;  %v2847_v21 = vld [vmem:[#allocation2 + $0x2d0] sm:$0xff]   ;;  %v2850_v24 = vld [vmem:[#allocation2 + $0x258] sm:$0xff]  }
  0x2c   :  { %v2844_v18 = vld [vmem:[#allocation2 + $0x208] sm:$0xff]   ;;  %v2848_v22 = vld [vmem:[#allocation2 + $0x210] sm:$0xff]   ;;  %v2851_v25 = vld [vmem:[#allocation2 + $0x2d8] sm:$0xff]  }
  0x2d   :  { %2454 = vmatpush3.bf16.msra.mxu0 %v2792_v26  ;;  %v2845_v19 = vld [vmem:[#allocation2 + $0x288] sm:$0xff]   ;;  %v2849_v23 = vld [vmem:[#allocation2 + $0x290] sm:$0xff]   ;;  %v2852_v26 = vld [vmem:[#allocation2 + $0x218] sm:$0xff]  }
  0x2e   :  { %2476 = vmatpush3.bf16.msra.mxu1 %v2793_v27  ;;  %2455 = vmatprep.subr.bf16.mxu0 %v2794_v28  ;;  %v2853_v27 = vld [vmem:[#allocation2 + $0x298] sm:$0xff]   ;;  %v2854_v28 = vld [vmem:[#allocation2 + $0x260] sm:$0xff]   ;;  %v2858_v32 = vld [vmem:[#allocation2 + $0x268] sm:$0xff]  }
  0x2f   :  { %2477 = vmatprep.subr.bf16.mxu1 %v2795_v29  ;;  %v2855_v29 = vld [vmem:[#allocation2 + $0x2e0] sm:$0xff]   ;;  %v2859_v33 = vld [vmem:[#allocation2 + $0x2e8] sm:$0xff]   ;;  %v2863_v37 = vld [vmem:[#allocation2 + $0x2f0] sm:$0xff]  }
  0x30   :  { %v2861_v35 = vld [vmem:[#allocation2 + $0x2a8] sm:$0xff]  }
  0x31   :  { %2456 = vmatpush3.bf16.msra.mxu0 %v2796_v30  ;;  %v2856_v30 = vld [vmem:[#allocation2 + $0x220] sm:$0xff]   ;;  %v2894_v6 = vld [vmem:[#allocation2 + $0x368] sm:$0xff]  }
  0x32   :  { %2478 = vmatpush3.bf16.msra.mxu1 %v2797_v31  ;;  %2485 = vmatprep.subr.bf16.mxu0 %v2802_v38  ;;  %v2857_v31 = vld [vmem:[#allocation2 + $0x2a0] sm:$0xff]   ;;  %v2864_v38 = vld [vmem:[#allocation2 + $0x230] sm:$0xff]   ;;  %v2897_v9 = vld [vmem:[#allocation2 + $0x3a8] sm:$0xff]  }
  0x33   :  { %2507 = vmatprep.subr.bf16.mxu1 %v2803_v39  ;;  %v2865_v39 = vld [vmem:[#allocation2 + $0x2b0] sm:$0xff]  }
  0x34   :  { %1678 = vmatmul.mubr.bf16.vlgmr.msra.gmra.mrb[0].mxu0 %v2227_v34  ;;  %v2860_v34 = vld [vmem:[#allocation2 + $0x228] sm:$0xff]  }
  0x35   :  { %1718 = vmatmul.mubr.bf16.vlgmr.msra.gmra.mrb[0].mxu1 %v2229_v36  ;;  %2486 = vmatpush3.bf16.msra.mxu0 %v2804_v40  ;;  %v2862_v36 = vld [vmem:[#allocation2 + $0x270] sm:$0xff]   ;;  %v2866_v40 = vld [vmem:[#allocation2 + $0x278] sm:$0xff]  }
  0x36   :  { %2508 = vmatpush3.bf16.msra.mxu1 %v2805_v41  ;;  %2487 = vmatprep.subr.bf16.mxu0 %v2806_v42  ;;  %v2867_v41 = vld [vmem:[#allocation2 + $0x2f8] sm:$0xff]  }
  0x37   :  { %2509 = vmatprep.subr.bf16.mxu1 %v2807_v43  ;;  %1757 = vmatprep.mubr.bf16.mxu0 %v2232_v8  ;;  %v2868_v42 = vld [vmem:[#allocation2 + $0x238] sm:$0xff]   ;;  %v2896_v8 = vld [vmem:[#allocation2 + $0x328] sm:$0xff]  }
  0x38   :  { %1797 = vmatprep.mubr.bf16.mxu1 %v2234_v11  ;;  %v2869_v43 = vld [vmem:[#allocation2 + $0x2b8] sm:$0xff]   ;;  %v2899_v11 = vld [vmem:[#allocation2 + $0x3f0] sm:$0xff]  }
  0x39   :  { %2488 = vmatpush3.bf16.msra.mxu0 %v2808_v44  ;;  %v39_v44 = vld [vmem:[%s3156_s0 + $0x20] sm:$0xff] }
  0x3a   :  { %2510 = vmatpush3.bf16.msra.mxu1 %v2809_v45  ;;  %2489 = vmatprep.subr.bf16.mxu0 %v2810_v46  ;;  %v40_v45 = vld [vmem:[%s3156_s0 + $0x28] sm:$0xff]  ;;  %v2235_v46 = vcombine.low %v39_v44, %v39_v44 }
  0x3b   :  { %2511 = vmatprep.subr.bf16.mxu1 %v2811_v47  ;;  %v2236_v47 = vcombine.high %v39_v44, %v39_v44  ;;  %v2930_v44 = vld [vmem:[#allocation2 + $0x468] sm:$0xff]  }
  0x3d   :  { %2490 = vmatpush3.bf16.msra.mxu0 %v2812_v48  ;;  %v2237_v48 = vcombine.low %v40_v45, %v40_v45 }
  0x3e   :  { %2512 = vmatpush3.bf16.msra.mxu1 %v2813_v49  ;;  %2491 = vmatprep.subr.bf16.mxu0 %v2814_v50  ;;  %v2238_v49 = vcombine.high %v40_v45, %v40_v45  ;;  %v2874_v50 = vld [vmem:[#allocation2 + $0x340] sm:$0xff]   ;;  %v2931_v45 = vld [vmem:[#allocation2 + $0x4e8] sm:$0xff]  }
  0x3f   :  { %2513 = vmatprep.subr.bf16.mxu1 %v2815_v51  ;;  %v2875_v51 = vld [vmem:[#allocation2 + $0x3c0] sm:$0xff]  }
  0x41   :  { %2492 = vmatpush3.bf16.msra.mxu0 %v2816_v52  ;;  %v2876_v52 = vld [vmem:[#allocation2 + $0x300] sm:$0xff]  }
  0x42   :  { %2514 = vmatpush3.bf16.msra.mxu1 %v2817_v53  ;;  %2493 = vmatprep.subr.bf16.mxu0 %v2818_v54  ;;  %v2877_v53 = vld [vmem:[#allocation2 + $0x380] sm:$0xff]   ;;  %v2878_v54 = vld [vmem:[#allocation2 + $0x348] sm:$0xff]  }
  0x43   :  { %2515 = vmatprep.subr.bf16.mxu1 %v2819_v55  ;;  %v2879_v55 = vld [vmem:[#allocation2 + $0x3c8] sm:$0xff]  }
  0x45   :  { %2494 = vmatpush3.bf16.msra.mxu0 %v2820_v56  ;;  %v2880_v56 = vld [vmem:[#allocation2 + $0x308] sm:$0xff]  }
  0x46   :  { %2516 = vmatpush3.bf16.msra.mxu1 %v2821_v57  ;;  %2495 = vmatprep.subr.bf16.mxu0 %v2822_v58  ;;  %v2881_v57 = vld [vmem:[#allocation2 + $0x388] sm:$0xff]   ;;  %v2882_v58 = vld [vmem:[#allocation2 + $0x350] sm:$0xff]  }
  0x47   :  { %2517 = vmatprep.subr.bf16.mxu1 %v2823_v59  ;;  %v2883_v59 = vld [vmem:[#allocation2 + $0x3d0] sm:$0xff]  }
  0x49   :  { %2496 = vmatpush3.bf16.msra.mxu0 %v2824_v60  ;;  %v2884_v60 = vld [vmem:[#allocation2 + $0x310] sm:$0xff]  }
  0x4a   :  { %2518 = vmatpush3.bf16.msra.mxu1 %v2825_v61  ;;  %2497 = vmatprep.subr.bf16.mxu0 %v2826_v62  ;;  %v2885_v61 = vld [vmem:[#allocation2 + $0x390] sm:$0xff]   ;;  %v2886_v62 = vld [vmem:[#allocation2 + $0x358] sm:$0xff]  }
  0x4b   :  { %2519 = vmatprep.subr.bf16.mxu1 %v2827_v63  ;;  %v2887_v63 = vld [vmem:[#allocation2 + $0x3d8] sm:$0xff]  }
  0x4d   :  { %2498 = vmatpush3.bf16.msra.mxu0 %v2828_v0  ;;  %v2888_v0 = vld [vmem:[#allocation2 + $0x318] sm:$0xff]  }
  0x4e   :  { %2520 = vmatpush3.bf16.msra.mxu1 %v2829_v1  ;;  %2499 = vmatprep.subr.bf16.mxu0 %v2830_v2  ;;  %v2889_v1 = vld [vmem:[#allocation2 + $0x398] sm:$0xff]   ;;  %v2890_v2 = vld [vmem:[#allocation2 + $0x360] sm:$0xff]  }
  0x4f   :  { %2521 = vmatprep.subr.bf16.mxu1 %v2831_v3  ;;  %v2891_v3 = vld [vmem:[#allocation2 + $0x3e0] sm:$0xff]  }
  0x51   :  { %2500 = vmatpush3.bf16.msra.mxu0 %v2832_v4  ;;  %v2892_v4 = vld [vmem:[#allocation2 + $0x320] sm:$0xff]  }
  0x52   :  { %2522 = vmatpush3.bf16.msra.mxu1 %v2833_v5  ;;  %2529 = vmatprep.subr.bf16.mxu0 %v2838_v12  ;;  %v2893_v5 = vld [vmem:[#allocation2 + $0x3a0] sm:$0xff]   ;;  %v2900_v12 = vld [vmem:[#allocation2 + $0x330] sm:$0xff]  }
  0x53   :  { %2551 = vmatprep.subr.bf16.mxu1 %v2839_v13  ;;  %v2901_v13 = vld [vmem:[#allocation2 + $0x3b0] sm:$0xff]  }
  0x54   :  { %1758 = vmatmul.mubr.bf16.vlgmr.msra.gmra.mrb[4].mxu0 %v2231_v7  ;;  %v2895_v7 = vld [vmem:[#allocation2 + $0x3e8] sm:$0xff]  }
  0x55   :  { %1798 = vmatmul.mubr.bf16.vlgmr.msra.gmra.mrb[4].mxu1 %v2233_v10  ;;  %2530 = vmatpush3.bf16.msra.mxu0 %v2840_v14  ;;  %v2898_v10 = vld [vmem:[#allocation2 + $0x370] sm:$0xff]   ;;  %v2902_v14 = vld [vmem:[#allocation2 + $0x378] sm:$0xff]  }
  0x56   :  { %2552 = vmatpush3.bf16.msra.mxu1 %v2841_v15  ;;  %2531 = vmatprep.subr.bf16.mxu0 %v2842_v16  ;;  %v2903_v15 = vld [vmem:[#allocation2 + $0x3f8] sm:$0xff]  }
  0x57   :  { %2553 = vmatprep.subr.bf16.mxu1 %v2843_v17  ;;  %1837 = vmatprep.mubr.bf16.mxu0 %v2236_v47  ;;  %v2904_v16 = vld [vmem:[#allocation2 + $0x338] sm:$0xff]   ;;  %v2933_v47 = vld [vmem:[#allocation2 + $0x4a8] sm:$0xff]  }
  0x58   :  { %1877 = vmatprep.mubr.bf16.mxu1 %v2238_v49  ;;  %v2905_v17 = vld [vmem:[#allocation2 + $0x3b8] sm:$0xff]   ;;  %v2935_v49 = vld [vmem:[#allocation2 + $0x4f0] sm:$0xff]  }
  0x59   :  { %2532 = vmatpush3.bf16.msra.mxu0 %v2844_v18  ;;  %v41_v18 = vld [vmem:[%s3156_s0 + $0x30] sm:$0xff] }
  0x5a   :  { %2554 = vmatpush3.bf16.msra.mxu1 %v2845_v19  ;;  %2533 = vmatprep.subr.bf16.mxu0 %v2846_v20  ;;  %v42_v19 = vld [vmem:[%s3156_s0 + $0x38] sm:$0xff]  ;;  %v2239_v20 = vcombine.low %v41_v18, %v41_v18 }
  0x5b   :  { %2555 = vmatprep.subr.bf16.mxu1 %v2847_v21  ;;  %v2240_v21 = vcombine.high %v41_v18, %v41_v18  ;;  %v2965_v18 = vld [vmem:[#allocation2 + $0x530] sm:$0xff]  }
  0x5d   :  { %2534 = vmatpush3.bf16.msra.mxu0 %v2848_v22  ;;  %v2241_v22 = vcombine.low %v42_v19, %v42_v19 }
  0x5e   :  { %2556 = vmatpush3.bf16.msra.mxu1 %v2849_v23  ;;  %2535 = vmatprep.subr.bf16.mxu0 %v2850_v24  ;;  %v2910_v23 = vld [vmem:[#allocation2 + $0x440] sm:$0xff]   ;;  %v2242_v24 = vcombine.high %v42_v19, %v42_v19  ;;  %v45_v19 = vld [vmem:[%s3156_s0 + $0x50] sm:$0xff] }
  0x5f   :  { %2557 = vmatprep.subr.bf16.mxu1 %v2851_v25  ;;  %v2911_v25 = vld [vmem:[#allocation2 + $0x4c0] sm:$0xff]  }
  0x61   :  { %2536 = vmatpush3.bf16.msra.mxu0 %v2852_v26  ;;  %v2912_v26 = vld [vmem:[#allocation2 + $0x400] sm:$0xff]  }
  0x62   :  { %2558 = vmatpush3.bf16.msra.mxu1 %v2853_v27  ;;  %2537 = vmatprep.subr.bf16.mxu0 %v2854_v28  ;;  %v2913_v27 = vld [vmem:[#allocation2 + $0x480] sm:$0xff]   ;;  %v2914_v28 = vld [vmem:[#allocation2 + $0x448] sm:$0xff]  }
  0x63   :  { %2559 = vmatprep.subr.bf16.mxu1 %v2855_v29  ;;  %v2915_v29 = vld [vmem:[#allocation2 + $0x4c8] sm:$0xff]  }
  0x65   :  { %2538 = vmatpush3.bf16.msra.mxu0 %v2856_v30  ;;  %v2916_v30 = vld [vmem:[#allocation2 + $0x408] sm:$0xff]  }
  0x66   :  { %2560 = vmatpush3.bf16.msra.mxu1 %v2857_v31  ;;  %2539 = vmatprep.subr.bf16.mxu0 %v2858_v32  ;;  %v2917_v31 = vld [vmem:[#allocation2 + $0x488] sm:$0xff]   ;;  %v2918_v32 = vld [vmem:[#allocation2 + $0x450] sm:$0xff]  }
  0x67   :  { %2561 = vmatprep.subr.bf16.mxu1 %v2859_v33  ;;  %v2919_v33 = vld [vmem:[#allocation2 + $0x4d0] sm:$0xff]  }
  0x69   :  { %2540 = vmatpush3.bf16.msra.mxu0 %v2860_v34  ;;  %v2920_v34 = vld [vmem:[#allocation2 + $0x410] sm:$0xff]  }
  0x6a   :  { %2562 = vmatpush3.bf16.msra.mxu1 %v2861_v35  ;;  %2541 = vmatprep.subr.bf16.mxu0 %v2862_v36  ;;  %v2921_v35 = vld [vmem:[#allocation2 + $0x490] sm:$0xff]   ;;  %v2922_v36 = vld [vmem:[#allocation2 + $0x458] sm:$0xff]  }
  0x6b   :  { %2563 = vmatprep.subr.bf16.mxu1 %v2863_v37  ;;  %v2923_v37 = vld [vmem:[#allocation2 + $0x4d8] sm:$0xff]  }
  0x6d   :  { %2542 = vmatpush3.bf16.msra.mxu0 %v2864_v38  ;;  %v2924_v38 = vld [vmem:[#allocation2 + $0x418] sm:$0xff]  }
  0x6e   :  { %2564 = vmatpush3.bf16.msra.mxu1 %v2865_v39  ;;  %2543 = vmatprep.subr.bf16.mxu0 %v2866_v40  ;;  %v2925_v39 = vld [vmem:[#allocation2 + $0x498] sm:$0xff]   ;;  %v2926_v40 = vld [vmem:[#allocation2 + $0x460] sm:$0xff]  }
  0x6f   :  { %2565 = vmatprep.subr.bf16.mxu1 %v2867_v41  ;;  %v2927_v41 = vld [vmem:[#allocation2 + $0x4e0] sm:$0xff]  }
  0x71   :  { %2544 = vmatpush3.bf16.msra.mxu0 %v2868_v42  ;;  %v2928_v42 = vld [vmem:[#allocation2 + $0x420] sm:$0xff]  }
  0x72   :  { %2566 = vmatpush3.bf16.msra.mxu1 %v2869_v43  ;;  %2573 = vmatprep.subr.bf16.mxu0 %v2874_v50  ;;  %v2929_v43 = vld [vmem:[#allocation2 + $0x4a0] sm:$0xff]   ;;  %v2936_v50 = vld [vmem:[#allocation2 + $0x430] sm:$0xff]  }
  0x73   :  { %2595 = vmatprep.subr.bf16.mxu1 %v2875_v51  ;;  %v2937_v51 = vld [vmem:[#allocation2 + $0x4b0] sm:$0xff]  }
  0x74   :  { %1838 = vmatmul.mubr.bf16.vlgmr.msra.gmra.mrb[8].mxu0 %v2235_v46  ;;  %v2932_v46 = vld [vmem:[#allocation2 + $0x428] sm:$0xff]  }
  0x75   :  { %1878 = vmatmul.mubr.bf16.vlgmr.msra.gmra.mrb[8].mxu1 %v2237_v48  ;;  %2574 = vmatpush3.bf16.msra.mxu0 %v2876_v52  ;;  %v2934_v48 = vld [vmem:[#allocation2 + $0x470] sm:$0xff]   ;;  %v2938_v52 = vld [vmem:[#allocation2 + $0x478] sm:$0xff]  }
  0x76   :  { %2596 = vmatpush3.bf16.msra.mxu1 %v2877_v53  ;;  %2575 = vmatprep.subr.bf16.mxu0 %v2878_v54  ;;  %v2939_v53 = vld [vmem:[#allocation2 + $0x4f8] sm:$0xff]  }
  0x77   :  { %2597 = vmatprep.subr.bf16.mxu1 %v2879_v55  ;;  %1917 = vmatprep.mubr.bf16.mxu0 %v2240_v21  ;;  %v2940_v54 = vld [vmem:[#allocation2 + $0x438] sm:$0xff]   ;;  %v2248_v21 = vcombine.high %v45_v19, %v45_v19 }
  0x78   :  { %1957 = vmatprep.mubr.bf16.mxu1 %v2242_v24  ;;  %v2941_v55 = vld [vmem:[#allocation2 + $0x4b8] sm:$0xff]  }
  0x79   :  { %2576 = vmatpush3.bf16.msra.mxu0 %v2880_v56  ;;  %v43_v56 = vld [vmem:[%s3156_s0 + $0x40] sm:$0xff]  ;;  %v2968_v24 = vld [vmem:[#allocation2 + $0x538] sm:$0xff]  }
  0x7a   :  { %2598 = vmatpush3.bf16.msra.mxu1 %v2881_v57  ;;  %2577 = vmatprep.subr.bf16.mxu0 %v2882_v58  ;;  %v2243_v57 = vcombine.low %v43_v56, %v43_v56  ;;  %v2244_v58 = vcombine.high %v43_v56, %v43_v56 }
  0x7b   :  { %2599 = vmatprep.subr.bf16.mxu1 %v2883_v59  ;;  %v44_v59 = vld [vmem:[%s3156_s0 + $0x48] sm:$0xff] }
  0x7d   :  { %2578 = vmatpush3.bf16.msra.mxu0 %v2884_v60  ;;  %v2245_v60 = vcombine.low %v44_v59, %v44_v59 }
  0x7e   :  { %2600 = vmatpush3.bf16.msra.mxu1 %v2885_v61  ;;  %2579 = vmatprep.subr.bf16.mxu0 %v2886_v62  ;;  %v2246_v61 = vcombine.high %v44_v59, %v44_v59  ;;  %v2946_v62 = vld [vmem:[#allocation2 + $0x540] sm:$0xff]  }
  0x7f   :  { %2601 = vmatprep.subr.bf16.mxu1 %v2887_v63  ;;  %v3005_v63 = vmov 0  }
  0x81   :  { %2580 = vmatpush3.bf16.msra.mxu0 %v2888_v0  ;;  %v2947_v0 = vld [vmem:[#allocation2 + $0x500] sm:$0xff]  }
  0x82   :  { %2602 = vmatpush3.bf16.msra.mxu1 %v2889_v1  ;;  %2581 = vmatprep.subr.bf16.mxu0 %v2890_v2  ;;  %v2948_v1 = vld [vmem:[#allocation2 + $0x580] sm:$0xff]   ;;  %v2949_v2 = vld [vmem:[#allocation2 + $0x548] sm:$0xff]  }
  0x83   :  { %2603 = vmatprep.subr.bf16.mxu1 %v2891_v3  ;;  %v2950_v3 = vld [vmem:[#allocation2 + $0x508] sm:$0xff]  }
  0x85   :  { %2582 = vmatpush3.bf16.msra.mxu0 %v2892_v4  ;;  %v2951_v4 = vld [vmem:[#allocation2 + $0x588] sm:$0xff]  }
  0x86   :  { %2604 = vmatpush3.bf16.msra.mxu1 %v2893_v5  ;;  %2583 = vmatprep.subr.bf16.mxu0 %v2894_v6  ;;  %v2952_v5 = vld [vmem:[#allocation2 + $0x550] sm:$0xff]  }
  0x87   :  { %2605 = vmatprep.subr.bf16.mxu1 %v2895_v7  ;;  %v2953_v6 = vld [vmem:[#allocation2 + $0x510] sm:$0xff]  }
  0x88   :  { %v2954_v7 = vld [vmem:[#allocation2 + $0x590] sm:$0xff]  }
  0x89   :  { %2584 = vmatpush3.bf16.msra.mxu0 %v2896_v8  ;;  %v2955_v8 = vld [vmem:[#allocation2 + $0x558] sm:$0xff]  }
  0x8a   :  { %2606 = vmatpush3.bf16.msra.mxu1 %v2897_v9  ;;  %2585 = vmatprep.subr.bf16.mxu0 %v2898_v10  ;;  %v2956_v9 = vld [vmem:[#allocation2 + $0x518] sm:$0xff]  }
  0x8b   :  { %2607 = vmatprep.subr.bf16.mxu1 %v2899_v11  ;;  %v2957_v10 = vld [vmem:[#allocation2 + $0x598] sm:$0xff]   ;;  %v2958_v11 = vld [vmem:[#allocation2 + $0x560] sm:$0xff]  }
  0x8d   :  { %2586 = vmatpush3.bf16.msra.mxu0 %v2900_v12  ;;  %v2959_v12 = vld [vmem:[#allocation2 + $0x520] sm:$0xff]  }
  0x8e   :  { %2608 = vmatpush3.bf16.msra.mxu1 %v2901_v13  ;;  %2587 = vmatprep.subr.bf16.mxu0 %v2902_v14  ;;  %v2960_v13 = vld [vmem:[#allocation2 + $0x5a0] sm:$0xff]   ;;  %v2961_v14 = vld [vmem:[#allocation2 + $0x568] sm:$0xff]  }
  0x8f   :  { %2609 = vmatprep.subr.bf16.mxu1 %v2903_v15  ;;  %v2962_v15 = vld [vmem:[#allocation2 + $0x528] sm:$0xff]  }
  0x91   :  { %2588 = vmatpush3.bf16.msra.mxu0 %v2904_v16  ;;  %v2963_v16 = vld [vmem:[#allocation2 + $0x5a8] sm:$0xff]  }
  0x92   :  { %2610 = vmatpush3.bf16.msra.mxu1 %v2905_v17  ;;  %2617 = vmatprep.subr.bf16.mxu0 %v2910_v23  ;;  %v2964_v17 = vld [vmem:[#allocation2 + $0x570] sm:$0xff]   ;;  %v46_v23 = vld [vmem:[%s3156_s0 + $0x58] sm:$0xff] }
  0x93   :  { %2639 = vmatprep.subr.bf16.mxu1 %v2911_v25  ;;  %v2969_v25 = vld [vmem:[#allocation2 + $0x5b8] sm:$0xff]  }
  0x94   :  { %1918 = vmatmul.mubr.bf16.vlgmr.msra.gmra.mrb[12].mxu0 %v2239_v20  ;;  %v2966_v20 = vld [vmem:[#allocation2 + $0x5b0] sm:$0xff]  }
  0x95   :  { %1958 = vmatmul.mubr.bf16.vlgmr.msra.gmra.mrb[12].mxu1 %v2241_v22  ;;  %2618 = vmatpush3.bf16.msra.mxu0 %v2912_v26  ;;  %v2967_v22 = vld [vmem:[#allocation2 + $0x578] sm:$0xff]   ;;  %v2250_v26 = vcombine.high %v46_v23, %v46_v23 }
  0x96   :  { %2640 = vmatpush3.bf16.msra.mxu1 %v2913_v27  ;;  %2619 = vmatprep.subr.bf16.mxu0 %v2914_v28  ;;  %v2247_v27 = vcombine.low %v45_v19, %v45_v19  ;;  %v2972_v28 = vld [vmem:[#allocation2 + $0x5c0] sm:$0xff]  }
  0x97   :  { %2641 = vmatprep.subr.bf16.mxu1 %v2915_v29  ;;  %1997 = vmatprep.mubr.bf16.mxu0 %v2244_v58  ;;  %v2973_v29 = vld [vmem:[#allocation2 + $0x5c8] sm:$0xff]  }
  0x98   :  { %2037 = vmatprep.mubr.bf16.mxu1 %v2246_v61  ;;  %v2132_v61 = vld [vmem:[%s3159_s3 + $0x30] sm:$0xff] }
  0x99   :  { %2620 = vmatpush3.bf16.msra.mxu0 %v2916_v30  ;;  %v2974_v30 = vld [vmem:[#allocation2 + $0x5d0] sm:$0xff]  }
  0x9a   :  { %2642 = vmatpush3.bf16.msra.mxu1 %v2917_v31  ;;  %2621 = vmatprep.subr.bf16.mxu0 %v2918_v32  ;;  %v2975_v31 = vld [vmem:[#allocation2 + $0x5d8] ss:$0 sps:$4 sm:$0xff]  }
  0x9b   :  { %2643 = vmatprep.subr.bf16.mxu1 %v2919_v33  ;;  %v1643_v32 = vsel %vm1641_vm1, %v2975_v31, 0  ;;  %v2249_v33 = vcombine.low %v46_v23, %v46_v23 }
  0x9d   :  { %2622 = vmatpush3.bf16.msra.mxu0 %v2920_v34 }
  0x9e   :  { %2644 = vmatpush3.bf16.msra.mxu1 %v2921_v35  ;;  %2623 = vmatprep.subr.bf16.mxu0 %v2922_v36  ;;  %v2226_v36 = vld [vmem:[%s3158_s2] ss:$0 sm:$0xff] }
  0x9f   :  { %2645 = vmatprep.subr.bf16.mxu1 %v2923_v37 }
  0xa1   :  { %2624 = vmatpush3.bf16.msra.mxu0 %v2924_v38 }
  0xa2   :  { %2646 = vmatpush3.bf16.msra.mxu1 %v2925_v39  ;;  %2625 = vmatprep.subr.bf16.mxu0 %v2926_v40 }
  0xa3   :  { %2647 = vmatprep.subr.bf16.mxu1 %v2927_v41 }
  0xa5   :  { %2626 = vmatpush3.bf16.msra.mxu0 %v2928_v42 }
  0xa6   :  { %2648 = vmatpush3.bf16.msra.mxu1 %v2929_v43  ;;  %2627 = vmatprep.subr.bf16.mxu0 %v2930_v44 }
  0xa7   :  { %2649 = vmatprep.subr.bf16.mxu1 %v2931_v45 }
  0xa9   :  { %2628 = vmatpush3.bf16.msra.mxu0 %v2932_v46 }
  0xaa   :  { %2650 = vmatpush3.bf16.msra.mxu1 %v2933_v47  ;;  %2629 = vmatprep.subr.bf16.mxu0 %v2934_v48  ;;  %v2126_v47 = vld [vmem:[%s3159_s3] sm:$0xff]  ;;  %v2127_v48 = vld [vmem:[%s3159_s3 + $0x8] sm:$0xff] }
  0xab   :  { %2651 = vmatprep.subr.bf16.mxu1 %v2935_v49  ;;  %v2128_v49 = vld [vmem:[%s3159_s3 + $0x10] sm:$0xff] }
  0xad   :  { %2630 = vmatpush3.bf16.msra.mxu0 %v2936_v50  ;;  %v3006_v50 = vmov 0.0|0.0  }
  0xae   :  { %2652 = vmatpush3.bf16.msra.mxu1 %v2937_v51  ;;  %2631 = vmatprep.subr.bf16.mxu0 %v2938_v52  ;;  %v2736_v51 = vpack.c.bf16 %v2127_v48, %v2126_v47  ;;  %v2129_v52 = vld [vmem:[%s3159_s3 + $0x18] sm:$0xff] }
  0xaf   :  { %2653 = vmatprep.subr.bf16.mxu1 %v2939_v53  ;;  %v2739_v53 = vpack.c.bf16 %v2129_v52, %v2128_v49 }
  0xb1   :  { %2632 = vmatpush3.bf16.msra.mxu0 %v2940_v54  ;;  %v2130_v54 = vld [vmem:[%s3159_s3 + $0x20] sm:$0xff] }
  0xb2   :  { %2654 = vmatpush3.bf16.msra.mxu1 %v2941_v55  ;;  %2661 = vmatprep.subr.bf16.mxu0 %v2946_v62  ;;  %v2131_v55 = vld [vmem:[%s3159_s3 + $0x28] sm:$0xff]  ;;  %v2133_v62 = vld [vmem:[%s3159_s3 + $0x38] sm:$0xff] }
  0xb3   :  { %2085 = vmatprep.subr.bf16.mxu1 %v3005_v63  ;;  %v2742_v56 = vpack.c.bf16 %v2131_v55, %v2130_v54 }
  0xb4   :  { %1998 = vmatmul.mubr.bf16.vlgmr.msra.gmra.mrb[16].mxu0 %v2243_v57 }
  0xb5   :  { %2038 = vmatmul.mubr.bf16.vlgmr.msra.gmra.mrb[16].mxu1 %v2245_v60  ;;  %2662 = vmatpush3.bf16.msra.mxu0 %v2947_v0 }
  0xb6   :  { %2086 = vmatpush1.bf16.msra.mxu1 %v2948_v1  ;;  %2663 = vmatprep.subr.bf16.mxu0 %v2949_v2 }
  0xb7   :  { %2087 = vmatprep.subr.bf16.mxu1 %v3005_v63  ;;  %2077 = vmatprep.mubr.bf16.mxu0 %v2248_v21 }
  0xb8   :  { %2439 = vmatprep.mubr.msk.bf16.mxu1 %vm1637_vm0, %v2250_v26 }
  0xb9   :  { %2664 = vmatpush3.bf16.msra.mxu0 %v2950_v3  ;;  %v2745_v3 = vpack.c.bf16 %v2133_v62, %v2132_v61 }
  0xba   :  { %2088 = vmatpush1.bf16.msra.mxu1 %v2951_v4  ;;  %2665 = vmatprep.subr.bf16.mxu0 %v2952_v5 }
  0xbb   :  { %2089 = vmatprep.subr.bf16.mxu1 %v3005_v63 }
  0xbd   :  { %2666 = vmatpush3.bf16.msra.mxu0 %v2953_v6 }
  0xbe   :  { %2090 = vmatpush1.bf16.msra.mxu1 %v2954_v7  ;;  %2667 = vmatprep.subr.bf16.mxu0 %v2955_v8  ;;  %v2134_v7 = vld [vmem:[%s3159_s3 + $0x40] sm:$0xff]  ;;  %v2135_v8 = vld [vmem:[%s3159_s3 + $0x48] sm:$0xff] }
  0xbf   :  { %2091 = vmatprep.subr.bf16.mxu1 %v3005_v63 }
  0xc1   :  { %2668 = vmatpush3.bf16.msra.mxu0 %v2956_v9  ;;  %v2748_v9 = vpack.c.bf16 %v2135_v8, %v2134_v7 }
  0xc2   :  { %2092 = vmatpush1.bf16.msra.mxu1 %v2957_v10  ;;  %2669 = vmatprep.subr.bf16.mxu0 %v2958_v11  ;;  %v2136_v10 = vld [vmem:[%s3159_s3 + $0x50] sm:$0xff]  ;;  %v2137_v11 = vld [vmem:[%s3159_s3 + $0x58] sm:$0xff] }
  0xc3   :  { %2093 = vmatprep.subr.bf16.mxu1 %v3005_v63 }
  0xc5   :  { %2670 = vmatpush3.bf16.msra.mxu0 %v2959_v12 }
  0xc6   :  { %2094 = vmatpush1.bf16.msra.mxu1 %v2960_v13  ;;  %2671 = vmatprep.subr.bf16.mxu0 %v2961_v14  ;;  %v2751_v13 = vpack.c.bf16 %v2137_v11, %v2136_v10  ;;  %v2138_v14 = vld [vmem:[%s3159_s3 + $0x60] sm:$0xff] }
  0xc7   :  { %2095 = vmatprep.subr.bf16.mxu1 %v3005_v63 }
  0xc9   :  { %2672 = vmatpush3.bf16.msra.mxu0 %v2962_v15  ;;  %v2139_v15 = vld [vmem:[%s3159_s3 + $0x68] sm:$0xff] }
  0xca   :  { %2096 = vmatpush1.bf16.msra.mxu1 %v2963_v16  ;;  %2673 = vmatprep.subr.bf16.mxu0 %v2964_v17  ;;  %v2754_v16 = vpack.c.bf16 %v2139_v15, %v2138_v14  ;;  %v2140_v17 = vld [vmem:[%s3159_s3 + $0x70] sm:$0xff] }
  0xcb   :  { %2097 = vmatprep.subr.bf16.mxu1 %v3005_v63 }
  0xcd   :  { %2674 = vmatpush3.bf16.msra.mxu0 %v2965_v18  ;;  %v2141_v18 = vld [vmem:[%s3159_s3 + $0x78] sm:$0xff] }
  0xce   :  { %2098 = vmatpush1.bf16.msra.mxu1 %v2966_v20  ;;  %2675 = vmatprep.subr.bf16.mxu0 %v2967_v22  ;;  %v2757_v19 = vpack.c.bf16 %v2141_v18, %v2140_v17  ;;  %v3008_v20 = vmov 0.0  }
  0xcf   :  { %2099 = vmatprep.subr.bf16.mxu1 %v3005_v63 }
  0xd1   :  { %2676 = vmatpush3.bf16.msra.mxu0 %v2968_v24 }
  0xd2   :  { %2100 = vmatpush1.bf16.msra.mxu1 %v2969_v25  ;;  %2735 = vmatprep.subr.bf16.mxu0 %v3006_v50 }
  0xd3   :  { %2101 = vmatprep.subr.bf16.mxu1 %v3005_v63 }
  0xd4   :  { %2078 = vmatmul.mubr.bf16.vlgmr.msra.gmra.mrb[20].mxu0 %v2247_v27 }
  0xd5   :  { %2737 = vmatpush3.bf16.msra.mxu0 %v2736_v51  ;;  %2732 = vmatprep.mubr.msk.f32.mxu0 %vm3007_vm2, %v3008_v20 }
  0xd6   :  { %2102 = vmatpush1.bf16.msra.mxu1 %v2972_v28  ;;  %2738 = vmatprep.subr.bf16.mxu0 %v3006_v50 }
  0xd7   :  { %2103 = vmatprep.subr.bf16.mxu1 %v3005_v63 }
  0xd9   :  { %2740 = vmatpush3.bf16.msra.mxu0 %v2739_v53 }
  0xda   :  { %2104 = vmatpush1.bf16.msra.mxu1 %v2973_v29  ;;  %2741 = vmatprep.subr.bf16.mxu0 %v3006_v50 }
  0xdb   :  { %2105 = vmatprep.subr.bf16.mxu1 %v3005_v63 }
  0xdd   :  { %2743 = vmatpush3.bf16.msra.mxu0 %v2742_v56 }
  0xde   :  { %2106 = vmatpush1.bf16.msra.mxu1 %v2974_v30  ;;  %2744 = vmatprep.subr.bf16.mxu0 %v3006_v50 }
  0xdf   :  { %2107 = vmatprep.subr.bf16.mxu1 %v3005_v63 }
  0xe1   :  { %2746 = vmatpush3.bf16.msra.mxu0 %v2745_v3 }
  0xe2   :  { %2108 = vmatpush1.bf16.msra.mxu1 %v1643_v32  ;;  %2747 = vmatprep.subr.bf16.mxu0 %v3006_v50 }
  0xe5   :  { %2118 = vmatmul.mubr.bf16.vlgmr.msra.gmra.mrb[20].mxu1 %v2249_v33  ;;  %2749 = vmatpush3.bf16.msra.mxu0 %v2748_v9 }
  0xe6   :  { %2750 = vmatprep.subr.bf16.mxu0 %v3006_v50 }
  0xe9   :  { %2752 = vmatpush3.bf16.msra.mxu0 %v2751_v13 }
  0xea   :  { %2753 = vmatprep.subr.bf16.mxu0 %v3006_v50 }
  0xed   :  { %2755 = vmatpush3.bf16.msra.mxu0 %v2754_v16 }
  0xee   :  { %2756 = vmatprep.subr.bf16.mxu0 %v3006_v50 }
  0xf1   :  { %2758 = vmatpush3.bf16.msra.mxu0 %v2757_v19 }
 0x107   :  { %v2457_v34 = vpop.f32.mrb[0].mxu0 }
 0x108   :  { %v2479_v35 = vpop.f32.mrb[0].mxu1  ;;  %v2458_v37 = vpop.f32.mrb[1].mxu0 }
 0x109   :  { %v2480_v38 = vpop.f32.mrb[1].mxu1  ;;  %v2459_v39 = vadd.f32 %v2458_v37, %v2457_v34  ;;  %v2460_v42 = vpop.f32.mrb[2].mxu0 }
 0x10a   :  { %v2481_v40 = vadd.f32 %v2480_v38, %v2479_v35  ;;  %v2482_v41 = vpop.f32.mrb[2].mxu1  ;;  %v2461_v44 = vpop.f32.mrb[3].mxu0 }
 0x10b   :  { %v2483_v43 = vpop.f32.mrb[3].mxu1  ;;  %v1680_v45 = vadd.f32 %v2459_v39, %v2226_v36 }
 0x10d   :  { %v1720_v46 = vadd.f32 %v2481_v40, %v1680_v45 }
 0x127   :  { %v2501_v57 = vpop.f32.mrb[4].mxu0 }
 0x128   :  { %v2523_v58 = vpop.f32.mrb[4].mxu1  ;;  %v2502_v59 = vpop.f32.mrb[5].mxu0 }
 0x129   :  { %v2524_v60 = vpop.f32.mrb[5].mxu1  ;;  %v2503_v63 = vadd.f32 %v2502_v59, %v2501_v57  ;;  %v2504_v2 = vpop.f32.mrb[6].mxu0 }
 0x12a   :  { %v2525_v0 = vadd.f32 %v2524_v60, %v2523_v58  ;;  %v2526_v1 = vpop.f32.mrb[6].mxu1  ;;  %v2505_v5 = vpop.f32.mrb[7].mxu0 }
 0x12b   :  { %v2527_v4 = vpop.f32.mrb[7].mxu1  ;;  %v1760_v6 = vadd.f32 %v2503_v63, %v1720_v46  ;;  %v2440_v5 = vld [vmem:[%s3160_s4] ss:$0 sm:$0xff] }
 0x12d   :  { %v1800_v12 = vadd.f32 %v2525_v0, %v1760_v6 }
 0x147   :  { %v2545_v21 = vpop.f32.mrb[8].mxu0 }
 0x148   :  { %v2567_v22 = vpop.f32.mrb[8].mxu1  ;;  %v2546_v23 = vpop.f32.mrb[9].mxu0 }
 0x149   :  { %v2547_v24 = vadd.f32 %v2546_v23, %v2545_v21  ;;  %v2568_v25 = vpop.f32.mrb[9].mxu1  ;;  %v2548_v26 = vpop.f32.mrb[10].mxu0 }
 0x14a   :  { %v2569_v27 = vadd.f32 %v2568_v25, %v2567_v22  ;;  %v2570_v28 = vpop.f32.mrb[10].mxu1  ;;  %v2549_v29 = vpop.f32.mrb[11].mxu0 }
 0x14b   :  { %v1840_v30 = vadd.f32 %v2547_v24, %v1800_v12  ;;  %v2571_v31 = vpop.f32.mrb[11].mxu1 }
 0x14d   :  { %v1880_v32 = vadd.f32 %v2569_v27, %v1840_v30 }
 0x167   :  { %v2589_v33 = vpop.f32.mrb[12].mxu0 }
 0x168   :  { %v2611_v34 = vpop.f32.mrb[12].mxu1  ;;  %v2590_v35 = vpop.f32.mrb[13].mxu0 }
 0x169   :  { %v2591_v36 = vadd.f32 %v2590_v35, %v2589_v33  ;;  %v2612_v37 = vpop.f32.mrb[13].mxu1  ;;  %v2592_v38 = vpop.f32.mrb[14].mxu0 }
 0x16a   :  { %v2613_v39 = vadd.f32 %v2612_v37, %v2611_v34  ;;  %v2614_v40 = vpop.f32.mrb[14].mxu1  ;;  %v2593_v41 = vpop.f32.mrb[15].mxu0 }
 0x16b   :  { %v1920_v42 = vadd.f32 %v2591_v36, %v1880_v32  ;;  %v2615_v43 = vpop.f32.mrb[15].mxu1 }
 0x16d   :  { %v1960_v44 = vadd.f32 %v2613_v39, %v1920_v42 }
 0x187   :  { %v2633_v45 = vpop.f32.mrb[16].mxu0 }
 0x188   :  { %v2655_v46 = vpop.f32.mrb[16].mxu1  ;;  %v2634_v47 = vpop.f32.mrb[17].mxu0 }
 0x189   :  { %v2656_v48 = vpop.f32.mrb[17].mxu1  ;;  %v2635_v49 = vadd.f32 %v2634_v47, %v2633_v45  ;;  %v2636_v52 = vpop.f32.mrb[18].mxu0 }
 0x18a   :  { %v2657_v50 = vadd.f32 %v2656_v48, %v2655_v46  ;;  %v2658_v51 = vpop.f32.mrb[18].mxu1  ;;  %v2637_v54 = vpop.f32.mrb[19].mxu0 }
 0x18b   :  { %v2659_v53 = vpop.f32.mrb[19].mxu1  ;;  %v2000_v55 = vadd.f32 %v2635_v49, %v1960_v44 }
 0x18d   :  { %v2040_v56 = vadd.f32 %v2657_v50, %v2000_v55 }
 0x1a7   :  { %v2677_v57 = vpop.f32.mrb[20].mxu0 }
 0x1a8   :  { %v2678_v58 = vpop.f32.mrb[21].mxu0 }
 0x1a9   :  { %v2679_v59 = vadd.f32 %v2678_v58, %v2677_v57  ;;  %v2680_v60 = vpop.f32.mrb[22].mxu0 }
 0x1aa   :  { %v2681_v61 = vpop.f32.mrb[23].mxu0 }
 0x1ab   :  { %v2080_v62 = vadd.f32 %v2679_v59, %v2040_v56 }
 0x1b8   :  { %v2119_v63 = vpop.f32.mrb[20].mxu1 }
 0x1b9   :  { %v2120_v0 = vadd.f32 %v2119_v63, %v2080_v62  ;;  %v2121_v1 = vpop.f32.mrb[21].mxu1 }
 0x1ba   :  { %v2122_v2 = vpop.f32.mrb[22].mxu1 }
 0x1bb   :  { %v2125_v3 = vmax.f32 %v2120_v0, 0.0  ;;  %v2123_v4 = vpop.f32.mrb[23].mxu1 }
 0x1bd   :  { %2733 = vmatmul.mubr.f32.vlgmr.msra.gmra.mrb[24].mxu0 %v2125_v3 }
 0x290   :  { %v2215_v6 = vpop.f32.mrb[24].mxu0 }
 0x291   :  { %v2216_v7 = vadd.f32 %v2440_v5, %v2215_v6  ;;  %v2734_v8 = vpop.f32.mrb[25].mxu0 }
 0x293   :  { %2220 = vst.msk [vmem:[%s3161_s5] sm:$0xff] %vm2219_vm3, %v2216_v7 }
 0x294   :  { %2225 = vsyncpa [#allocation3], 1 }

</bundles_post_ra>
